<compile_context>
chip_gen: v6e
topology: v6e:2x2x1
jax: 0.10.0
libtpu: 0.0.40
codegen_flags: <defaults>
</compile_context>

<pallas_src>
import functools
from typing import NamedTuple

import jax
import jax.numpy as jnp
from jax import lax
from jax.experimental import pallas as pl
from jax.experimental.pallas import tpu as pltpu

LANE = 128            # lane width (last-dim tiling unit)
SUBLANE = 8           # f32 sublane tiling unit
DEFAULT_H_CHUNK = 1024  # hidden-dim slab width (multiple of LANE)

_HAS_BUFFERED = hasattr(pl, "Buffered")   # one-time feature probe (no try/except
                                          # around the actual kernel call)


def _round_up(a: int, b: int) -> int:
    return ((a + b - 1) // b) * b


@functools.lru_cache(maxsize=1)
def _hw_config():
    """One-time hardware probe: (usable VMEM bytes, default row tile)."""
    kind = ""
    try:
        kind = jax.devices()[0].device_kind.lower()
    except Exception:   # capability probe only -- never wraps the kernel call
        pass
    is_v7 = ("v7" in kind) or ("tpu7" in kind)
    is_v5 = "v5" in kind
    vmem_bytes = None
    try:
        vmem_bytes = int(pltpu.get_tpu_info().vmem_capacity_bytes)
    except Exception:   # older builds: fall back to generation heuristics
        vmem_bytes = None
    if vmem_bytes is None or vmem_bytes <= 0:
        vmem_bytes = (64 << 20) if (is_v7 or not kind) else (128 << 20)
    headroom = 8 << 20      # Mosaic internal scratch / semaphores / pipeline slack
    vmem_budget = max(vmem_bytes - headroom, 16 << 20)
    default_tm = 256 if is_v5 else 512   # v5e steps are already ~20us at tm=256
    return vmem_budget, default_tm


class FFNParams(NamedTuple):
    """Padded, pre-cast parameters (build once with prepare_params)."""
    w1: jax.Array      # (nc, Dp, CH) bf16   -- column chunks of Linear1 weight
    b1: jax.Array      # (nc, 1,  CH) f32
    w2: jax.Array      # (nc, CH, Dp) bf16   -- row chunks of Linear2 weight
    b2: jax.Array      # (1, Dp) f32
    gamma: jax.Array   # (1, Dp) f32
    beta: jax.Array    # (1, Dp) f32
    d: int             # real feature dim
    h: int             # real hidden dim


def prepare_params(w1, b1, w2, b2, gamma, beta, *, h_chunk=None):
    """Pad to lane width, cast weights to bf16, and chunk the hidden dim ONCE."""
    D, H = w1.shape
    assert w2.shape == (H, D)
    Dp = _round_up(D, LANE)
    if h_chunk is None:
        h_chunk = min(DEFAULT_H_CHUNK, _round_up(H, LANE))
    assert h_chunk % LANE == 0
    Hp = _round_up(H, h_chunk)
    nc = Hp // h_chunk

    w1p = jnp.pad(w1, ((0, Dp - D), (0, Hp - H))).astype(jnp.bfloat16)
    w1p = w1p.reshape(Dp, nc, h_chunk).transpose(1, 0, 2)          # (nc, Dp, CH)
    w2p = jnp.pad(w2, ((0, Hp - H), (0, Dp - D))).astype(jnp.bfloat16)
    w2p = w2p.reshape(nc, h_chunk, Dp)                             # (nc, CH, Dp)
    b1p = jnp.pad(b1, (0, Hp - H)).astype(jnp.float32).reshape(nc, 1, h_chunk)
    b2p = jnp.pad(b2, (0, Dp - D)).astype(jnp.float32).reshape(1, Dp)
    gp = jnp.pad(gamma, (0, Dp - D)).astype(jnp.float32).reshape(1, Dp)
    btp = jnp.pad(beta, (0, Dp - D)).astype(jnp.float32).reshape(1, Dp)
    return FFNParams(w1p, b1p, w2p, b2p, gp, btp, D, H)


def _residual_layernorm_store(x_f32, y, gamma, beta, o_ref, d_valid):
    """Residual + LayerNorm over the real feature dim (padded cols are zero)."""
    # Dropout: identity at inference time (nn.Dropout is a no-op in eval mode).
    # TODO(synk): training-mode dropout (pltpu.prng_random_bits mask) not emitted.
    z = x_f32 + y
    inv_d = 1.0 / d_valid
    mean = jnp.sum(z, axis=-1, keepdims=True) * inv_d
    # One-pass variance (clamped); fine for post-residual LN activations.
    var = jnp.maximum(jnp.sum(z * z, axis=-1, keepdims=True) * inv_d - mean * mean, 0.0)
    zn = (z - mean) * lax.rsqrt(var + 1e-5)
    o_ref[...] = (zn * gamma + beta).astype(o_ref.dtype)


def ffn_resident_kernel(x_ref, w1_ref, b1_ref, w2_ref, b2_ref, g_ref, beta_ref,
                        o_ref, acc_ref=None, *, d_valid):
    """One (tm, Dp) row tile; all (chunked) bf16 weights resident in VMEM."""
    nc = w1_ref.shape[0]
    x_f32 = x_ref[...].astype(jnp.float32)
    x_bf = x_ref[...].astype(jnp.bfloat16)

    if nc == 1:
        h = jnp.maximum(jnp.dot(x_bf, w1_ref[0], preferred_element_type=jnp.float32)
                        + b1_ref[0], 0.0)
        y = jnp.dot(h.astype(jnp.bfloat16), w2_ref[0],
                    preferred_element_type=jnp.float32)
    else:
        # Hidden-dim chunk loop: bounds the live (tm, CH) intermediate instead
        # of materializing a full (tm, Hp) h in f32 + bf16.
        assert acc_ref is not None
        acc_ref[...] = jnp.zeros_like(acc_ref)

        @pl.loop(0, nc)
        def _(k):
            h = jnp.maximum(
                jnp.dot(x_bf, w1_ref[k], preferred_element_type=jnp.float32)
                + b1_ref[k], 0.0)
            acc_ref[...] += jnp.dot(h.astype(jnp.bfloat16), w2_ref[k],
                                    preferred_element_type=jnp.float32)

        y = acc_ref[...]

    y = y + b2_ref[...]
    _residual_layernorm_store(x_f32, y, g_ref[...], beta_ref[...], o_ref, d_valid)


def ffn_htiled_kernel(x_ref, w1_ref, b1_ref, w2_ref, b2_ref, g_ref, beta_ref,
                      o_ref, acc_ref, *, d_valid):
    """Hidden-dim tiled via the grid: weights streamed per (row, chunk) step."""
    k = pl.program_id(1)

    @pl.when(k == 0)
    def _():
        acc_ref[...] = jnp.zeros_like(acc_ref)

    x_bf = x_ref[...].astype(jnp.bfloat16)
    h = jnp.maximum(jnp.dot(x_bf, w1_ref[...], preferred_element_type=jnp.float32)
                    + b1_ref[...], 0.0)
    acc_ref[...] += jnp.dot(h.astype(jnp.bfloat16), w2_ref[...],
                            preferred_element_type=jnp.float32)

    @pl.when(k == pl.num_programs(1) - 1)
    def _():
        x_f32 = x_ref[...].astype(jnp.float32)
        y = acc_ref[...] + b2_ref[...]
        _residual_layernorm_store(x_f32, y, g_ref[...], beta_ref[...], o_ref, d_valid)


def _const_spec(shape):
    """BlockSpec for grid-invariant operands; single-buffered when supported."""
    zero = (0,) * len(shape)
    if _HAS_BUFFERED:
        return pl.BlockSpec(shape, lambda *_: zero, pipeline_mode=pl.Buffered(1))
    return pl.BlockSpec(shape, lambda *_: zero)


def _vmem_estimate(*, h_tiled, tm, dp, hp, ch, nc, const_buf, io_itemsize):
    io = 2 * 2 * tm * dp * io_itemsize               # x + out tiles, double-buffered
    small = const_buf * (32 * hp + 96 * dp)          # biases / gamma / beta (padded)
    if h_tiled:
        w = 2 * (2 * dp * ch + 2 * ch * dp)          # W1/W2 chunk blocks, dbl-buffered bf16
        inter = tm * ch * 6 + 2 * tm * dp * 4        # h chunk (f32+bf16) + acc + temp
    else:
        w = const_buf * 4 * dp * hp                  # resident W1 + W2, bf16
        inter = tm * ch * 6 + (2 if nc > 1 else 1) * tm * dp * 4
    return io + small + w + inter


def feed_forward_sublayer(x, params: FFNParams, *, tm=None, force_h_tiling=False):
    """x: [B, S, D] float array; params from prepare_params(). Not jitted here
    (shape/tile policy uses Python ints), but is safe to wrap in jit per shape."""
    B, S, D = x.shape
    assert D == params.d, (D, params.d)
    nc, Dp, CH = params.w1.shape
    Hp = nc * CH
    M = B * S
    x_itemsize = jnp.dtype(x.dtype).itemsize

    vmem_budget, default_tm = _hw_config()
    const_buf = 1 if _HAS_BUFFERED else 2

    # Row tile: generation-aware default; guarantee >=2 grid steps when M allows
    # it (both v7x TensorCores get work); multiple of the f32 sublane count.
    if tm is None:
        tm = default_tm
    if M < 2 * tm:
        tm = (M + 1) // 2
    tm = max(SUBLANE, _round_up(min(tm, max(M, 1)), SUBLANE))

    # Path selection: keep bf16 weights resident unless they would eat >~60% of
    # the per-core VMEM budget (v7x: ~56 MiB usable) -> H-tiled grid path.
    resident_w_bytes = const_buf * 4 * Dp * Hp
    h_tiled = force_h_tiling or (resident_w_bytes > 0.6 * vmem_budget)

    # Shrink tm until the estimated footprint fits the budget.
    while tm > SUBLANE and _vmem_estimate(
            h_tiled=h_tiled, tm=tm, dp=Dp, hp=Hp, ch=CH, nc=nc,
            const_buf=const_buf, io_itemsize=x_itemsize) > vmem_budget:
        tm = max(SUBLANE, _round_up(tm // 2, SUBLANE))

    Mp = _round_up(M, tm)
    x2 = x.reshape(M, D)
    needs_pad = (Dp != D) or (Mp != M)
    if needs_pad:
        # Slow path only when D is not lane-aligned or M does not divide tm.
        x2 = jnp.pad(x2, ((0, Mp - M), (0, Dp - D)))

    cost = pl.CostEstimate(
        flops=4 * M * D * params.h,
        transcendentals=M,
        bytes_accessed=int(2 * M * D * x_itemsize + 4 * D * params.h
                           + 4 * (params.h + 3 * D)))

    if not h_tiled:
        kernel = functools.partial(ffn_resident_kernel, d_valid=float(D))
        grid = (Mp // tm,)
        in_specs = [
            pl.BlockSpec((tm, Dp), lambda i: (i, 0)),            # x row tile
            _const_spec((nc, Dp, CH)),                           # W1 (resident)
            _const_spec((nc, 1, CH)),                            # b1
            _const_spec((nc, CH, Dp)),                           # W2 (resident)
            _const_spec((1, Dp)),                                # b2
            _const_spec((1, Dp)),                                # gamma
            _const_spec((1, Dp)),                                # beta
        ]
        out_specs = pl.BlockSpec((tm, Dp), lambda i: (i, 0))
        scratch = [pltpu.VMEM((tm, Dp), jnp.float32)] if nc > 1 else []
        dims = ("parallel",)
    else:
        kernel = functools.partial(ffn_htiled_kernel, d_valid=float(D))
        grid = (Mp // tm, nc)                                    # reduction axis last
        in_specs = [
            pl.BlockSpec((tm, Dp), lambda i, k: (i, 0)),         # x (resident over k)
            pl.BlockSpec((None, Dp, CH), lambda i, k: (k, 0, 0)),  # W1 chunk
            pl.BlockSpec((None, 1, CH), lambda i, k: (k, 0, 0)),   # b1 chunk
            pl.BlockSpec((None, CH, Dp), lambda i, k: (k, 0, 0)),  # W2 chunk
            _const_spec((1, Dp)),                                # b2
            _const_spec((1, Dp)),                                # gamma
            _const_spec((1, Dp)),                                # beta
        ]
        out_specs = pl.BlockSpec((tm, Dp), lambda i, k: (i, 0))
        scratch = [pltpu.VMEM((tm, Dp), jnp.float32)]
        dims = ("parallel", "arbitrary")

    out = pl.pallas_call(
        kernel,
        out_shape=jax.ShapeDtypeStruct((Mp, Dp), x.dtype),
        grid_spec=pltpu.PrefetchScalarGridSpec(
            num_scalar_prefetch=0,
            grid=grid,
            in_specs=in_specs,
            out_specs=out_specs,
            scratch_shapes=scratch),
        compiler_params=pltpu.CompilerParams(
            dimension_semantics=dims,
            vmem_limit_bytes=int(vmem_budget)),
        cost_estimate=cost,
    )(x2, params.w1, params.b1, params.w2, params.b2, params.gamma, params.beta)

    if needs_pad:
        out = out[:M, :D]
    return out.reshape(B, S, D)


def init_params(key, size):
    """Parameter init mirroring the module's __init__.

    linear_1.weight: xavier_normal, (4*size, size)  -> stored transposed (size, 4*size)
    linear_2.weight: xavier_normal, (size, 4*size)  -> stored transposed (4*size, size)
    biases: U(-1/sqrt(fan_in), 1/sqrt(fan_in))  (PyTorch Linear default)
    layer_norm: gamma=1, beta=0
    """
    hidden = 4 * size
    k1, k2, k3, k4 = jax.random.split(key, 4)

    xavier_std = (2.0 / (size + hidden)) ** 0.5
    w1 = jax.random.normal(k1, (size, hidden), jnp.float32) * xavier_std
    w2 = jax.random.normal(k2, (hidden, size), jnp.float32) * xavier_std

    b1 = jax.random.uniform(k3, (hidden,), jnp.float32, -1.0 / size ** 0.5, 1.0 / size ** 0.5)
    b2 = jax.random.uniform(k4, (size,), jnp.float32, -1.0 / hidden ** 0.5, 1.0 / hidden ** 0.5)

    gamma = jnp.ones((size,), jnp.float32)
    beta = jnp.zeros((size,), jnp.float32)
    return w1, b1, w2, b2, gamma, beta


if __name__ == "__main__":
    k0 = jax.random.PRNGKey(0)
    kx1, kp1, kx2, kp2 = jax.random.split(k0, 4)

    def reference(x, w1, b1, w2, b2, gamma, beta, cast):
        h = jnp.maximum(
            jnp.dot(cast(x), cast(w1), preferred_element_type=jnp.float32) + b1, 0.0)
        y = jnp.dot(cast(h), cast(w2), preferred_element_type=jnp.float32) + b2
        z = x + y
        mu = z.mean(-1, keepdims=True)
        var = ((z - mu) ** 2).mean(-1, keepdims=True)
        return (z - mu) / jnp.sqrt(var + 1e-5) * gamma + beta

    def check(out, x, raw):
        w1, b1, w2, b2, gamma, beta = raw
        ref_bf = reference(x, w1, b1, w2, b2, gamma, beta,
                           lambda a: a.astype(jnp.bfloat16))
        ref_f32 = reference(x, w1, b1, w2, b2, gamma, beta,
                            lambda a: a.astype(jnp.float32))
        assert out.shape == x.shape and out.dtype == x.dtype
        assert jnp.allclose(out, ref_bf, atol=2e-3, rtol=2e-3), \
            float(jnp.max(jnp.abs(out - ref_bf)))
        assert jnp.allclose(out, ref_f32, atol=5e-2, rtol=5e-2), \
            float(jnp.max(jnp.abs(out - ref_f32)))

    # Test 1: module-sized shapes (batch=2, seq=8, size=32): resident path, nc=1.
    batch, seq, size = 2, 8, 32
    x1 = jax.random.normal(kx1, (batch, seq, size), jnp.float32)
    raw1 = init_params(kp1, size)
    params1 = prepare_params(*raw1)
    out1 = jax.block_until_ready(feed_forward_sublayer(x1, params1))
    check(out1, x1, raw1)

    # Test 2: slightly larger (still small) shapes exercising (a) the in-kernel
    # hidden-chunk loop on the resident path and (b) the H-tiled grid path.
    batch2, seq2, size2 = 2, 64, 256          # D=256, H=1024, chunked as 4 x 256
    x2 = jax.random.normal(kx2, (batch2, seq2, size2), jnp.float32)
    raw2 = init_params(kp2, size2)
    params2 = prepare_params(*raw2, h_chunk=256)
    out2a = jax.block_until_ready(feed_forward_sublayer(x2, params2))
    check(out2a, x2, raw2)
    out2b = jax.block_until_ready(
        feed_forward_sublayer(x2, params2, force_h_tiling=True))
    check(out2b, x2, raw2)

    print("KERNEL_OK")
</pallas_src>

<mosaic_0001>
module attributes {stable_mosaic.version = 11 : i64} {
  func.func @ffn_resident_kernel(%arg0: i32, %arg1: memref<8x128xf32, #tpu.memory_space<vmem>>, %arg2: memref<1x128x128xbf16, #tpu.memory_space<vmem>>, %arg3: memref<1x1x128xf32, #tpu.memory_space<vmem>>, %arg4: memref<1x128x128xbf16, #tpu.memory_space<vmem>>, %arg5: memref<1x128xf32, #tpu.memory_space<vmem>>, %arg6: memref<1x128xf32, #tpu.memory_space<vmem>>, %arg7: memref<1x128xf32, #tpu.memory_space<vmem>>, %arg8: memref<8x128xf32, #tpu.memory_space<vmem>>) attributes {dimension_semantics = [#tpu.dimension_semantics<parallel>], iteration_bounds = array<i64: 2>, scalar_prefetch = 0 : i64, scratch_operands = 0 : i64, tpu.core_type = #tpu.core_type<tc>, window_params = [{transform_indices = @transform_0, window_bounds = array<i64: 8, 128>}, {pipeline_mode = #tpu.pipeline_mode<synchronous>, transform_indices = @transform_1, window_bounds = array<i64: 1, 128, 128>}, {pipeline_mode = #tpu.pipeline_mode<synchronous>, transform_indices = @transform_2, window_bounds = array<i64: 1, 1, 128>}, {pipeline_mode = #tpu.pipeline_mode<synchronous>, transform_indices = @transform_3, window_bounds = array<i64: 1, 128, 128>}, {pipeline_mode = #tpu.pipeline_mode<synchronous>, transform_indices = @transform_4, window_bounds = array<i64: 1, 128>}, {pipeline_mode = #tpu.pipeline_mode<synchronous>, transform_indices = @transform_5, window_bounds = array<i64: 1, 128>}, {pipeline_mode = #tpu.pipeline_mode<synchronous>, transform_indices = @transform_6, window_bounds = array<i64: 1, 128>}, {transform_indices = @transform_7, window_bounds = array<i64: 8, 128>}]} {
    %c0 = arith.constant 0 : index
    %c0_0 = arith.constant 0 : index
    %0 = vector.load %arg1[%c0, %c0_0] : memref<8x128xf32, #tpu.memory_space<vmem>>, vector<8x128xf32>
    %c0_1 = arith.constant 0 : index
    %c0_2 = arith.constant 0 : index
    %1 = vector.load %arg1[%c0_1, %c0_2] : memref<8x128xf32, #tpu.memory_space<vmem>>, vector<8x128xf32>
    %2 = arith.truncf %1 : vector<8x128xf32> to vector<8x128xbf16>
    %c0_3 = arith.constant 0 : index
    %c0_4 = arith.constant 0 : index
    %c0_5 = arith.constant 0 : index
    %3 = vector.load %arg2[%c0_3, %c0_4, %c0_5] : memref<1x128x128xbf16, #tpu.memory_space<vmem>>, vector<1x128x128xbf16>
    %4 = vector.shape_cast %3 : vector<1x128x128xbf16> to vector<128x128xbf16>
    %cst = arith.constant dense<0.000000e+00> : vector<8x128xf32>
    %5 = tpu.matmul %2, %4, %cst {dimension_numbers = #tpu.dot_dimension_numbers<[1], [0], [0], [1], [0, 0, 1, 1], [], []>} : vector<8x128xbf16>, vector<128x128xbf16>, vector<8x128xf32> -> vector<8x128xf32>
    %c0_6 = arith.constant 0 : index
    %c0_7 = arith.constant 0 : index
    %c0_8 = arith.constant 0 : index
    %6 = vector.load %arg3[%c0_6, %c0_7, %c0_8] : memref<1x1x128xf32, #tpu.memory_space<vmem>>, vector<1x1x128xf32>
    %7 = vector.shape_cast %6 : vector<1x1x128xf32> to vector<1x128xf32>
    %8 = vector.broadcast %7 : vector<1x128xf32> to vector<8x128xf32>
    %9 = arith.addf %5, %8 : vector<8x128xf32>
    %cst_9 = arith.constant 0.000000e+00 : f32
    %10 = vector.broadcast %cst_9 : f32 to vector<8x128xf32>
    %11 = arith.maximumf %9, %10 : vector<8x128xf32>
    %12 = arith.truncf %11 : vector<8x128xf32> to vector<8x128xbf16>
    %c0_10 = arith.constant 0 : index
    %c0_11 = arith.constant 0 : index
    %c0_12 = arith.constant 0 : index
    %13 = vector.load %arg4[%c0_10, %c0_11, %c0_12] : memref<1x128x128xbf16, #tpu.memory_space<vmem>>, vector<1x128x128xbf16>
    %14 = vector.shape_cast %13 : vector<1x128x128xbf16> to vector<128x128xbf16>
    %cst_13 = arith.constant dense<0.000000e+00> : vector<8x128xf32>
    %15 = tpu.matmul %12, %14, %cst_13 {dimension_numbers = #tpu.dot_dimension_numbers<[1], [0], [0], [1], [0, 0, 1, 1], [], []>} : vector<8x128xbf16>, vector<128x128xbf16>, vector<8x128xf32> -> vector<8x128xf32>
    %c0_14 = arith.constant 0 : index
    %c0_15 = arith.constant 0 : index
    %16 = vector.load %arg5[%c0_14, %c0_15] : memref<1x128xf32, #tpu.memory_space<vmem>>, vector<1x128xf32>
    %17 = vector.broadcast %16 : vector<1x128xf32> to vector<8x128xf32>
    %18 = arith.addf %15, %17 : vector<8x128xf32>
    %c0_16 = arith.constant 0 : index
    %c0_17 = arith.constant 0 : index
    %19 = vector.load %arg6[%c0_16, %c0_17] : memref<1x128xf32, #tpu.memory_space<vmem>>, vector<1x128xf32>
    %c0_18 = arith.constant 0 : index
    %c0_19 = arith.constant 0 : index
    %20 = vector.load %arg7[%c0_18, %c0_19] : memref<1x128xf32, #tpu.memory_space<vmem>>, vector<1x128xf32>
    %21 = arith.addf %0, %18 : vector<8x128xf32>
    %cst_20 = arith.constant dense<0.000000e+00> : vector<8xf32>
    %22 = vector.multi_reduction <add>, %21, %cst_20 [1] : vector<8x128xf32> to vector<8xf32>
    %23 = vector.shape_cast %22 : vector<8xf32> to vector<8x1xf32>
    %cst_21 = arith.constant 3.125000e-02 : f32
    %24 = vector.broadcast %cst_21 : f32 to vector<8x1xf32>
    %25 = arith.mulf %23, %24 : vector<8x1xf32>
    %26 = arith.mulf %21, %21 : vector<8x128xf32>
    %cst_22 = arith.constant dense<0.000000e+00> : vector<8xf32>
    %27 = vector.multi_reduction <add>, %26, %cst_22 [1] : vector<8x128xf32> to vector<8xf32>
    %28 = vector.shape_cast %27 : vector<8xf32> to vector<8x1xf32>
    %cst_23 = arith.constant 3.125000e-02 : f32
    %29 = vector.broadcast %cst_23 : f32 to vector<8x1xf32>
    %30 = arith.mulf %28, %29 : vector<8x1xf32>
    %31 = arith.mulf %25, %25 : vector<8x1xf32>
    %32 = arith.subf %30, %31 : vector<8x1xf32>
    %cst_24 = arith.constant 0.000000e+00 : f32
    %33 = vector.broadcast %cst_24 : f32 to vector<8x1xf32>
    %34 = arith.maximumf %32, %33 : vector<8x1xf32>
    %35 = vector.broadcast %25 : vector<8x1xf32> to vector<8x128xf32>
    %36 = arith.subf %21, %35 : vector<8x128xf32>
    %cst_25 = arith.constant 9.99999974E-6 : f32
    %37 = vector.broadcast %cst_25 : f32 to vector<8x1xf32>
    %38 = arith.addf %34, %37 : vector<8x1xf32>
    %39 = math.rsqrt %38 : vector<8x1xf32>
    %40 = vector.broadcast %39 : vector<8x1xf32> to vector<8x128xf32>
    %41 = arith.mulf %36, %40 : vector<8x128xf32>
    %42 = vector.broadcast %19 : vector<1x128xf32> to vector<8x128xf32>
    %43 = arith.mulf %41, %42 : vector<8x128xf32>
    %44 = vector.broadcast %20 : vector<1x128xf32> to vector<8x128xf32>
    %45 = arith.addf %43, %44 : vector<8x128xf32>
    %c0_26 = arith.constant 0 : index
    %c0_27 = arith.constant 0 : index
    %46 = vector.load %arg8[%c0_26, %c0_27] : memref<8x128xf32, #tpu.memory_space<vmem>>, vector<8x128xf32>
    tpu.vector_store %arg8[%c0_26, %c0_27], %45 {strides = array<i32>} : memref<8x128xf32, #tpu.memory_space<vmem>>, vector<8x128xf32>,
    return
  }
  func.func @transform_0(%arg0: i32) -> (i32, i32) {
    %c0_i32 = arith.constant 0 : i32
    %c0_i32_0 = arith.constant 0 : i32
    return %arg0, %c0_i32 : i32, i32
  }
  func.func @transform_1(%arg0: i32) -> (i32, i32, i32) {
    %c0_i32 = arith.constant 0 : i32
    %c0_i32_0 = arith.constant 0 : i32
    %c0_i32_1 = arith.constant 0 : i32
    %c0_i32_2 = arith.constant 0 : i32
    return %c0_i32, %c0_i32_0, %c0_i32_1 : i32, i32, i32
  }
  func.func @transform_2(%arg0: i32) -> (i32, i32, i32) {
    %c0_i32 = arith.constant 0 : i32
    %c0_i32_0 = arith.constant 0 : i32
    %c0_i32_1 = arith.constant 0 : i32
    %c0_i32_2 = arith.constant 0 : i32
    return %c0_i32, %c0_i32_0, %c0_i32_1 : i32, i32, i32
  }
  func.func @transform_3(%arg0: i32) -> (i32, i32, i32) {
    %c0_i32 = arith.constant 0 : i32
    %c0_i32_0 = arith.constant 0 : i32
    %c0_i32_1 = arith.constant 0 : i32
    %c0_i32_2 = arith.constant 0 : i32
    return %c0_i32, %c0_i32_0, %c0_i32_1 : i32, i32, i32
  }
  func.func @transform_4(%arg0: i32) -> (i32, i32) {
    %c0_i32 = arith.constant 0 : i32
    %c0_i32_0 = arith.constant 0 : i32
    %c0_i32_1 = arith.constant 0 : i32
    return %c0_i32, %c0_i32_0 : i32, i32
  }
  func.func @transform_5(%arg0: i32) -> (i32, i32) {
    %c0_i32 = arith.constant 0 : i32
    %c0_i32_0 = arith.constant 0 : i32
    %c0_i32_1 = arith.constant 0 : i32
    return %c0_i32, %c0_i32_0 : i32, i32
  }
  func.func @transform_6(%arg0: i32) -> (i32, i32) {
    %c0_i32 = arith.constant 0 : i32
    %c0_i32_0 = arith.constant 0 : i32
    %c0_i32_1 = arith.constant 0 : i32
    return %c0_i32, %c0_i32_0 : i32, i32
  }
  func.func @transform_7(%arg0: i32) -> (i32, i32) {
    %c0_i32 = arith.constant 0 : i32
    %c0_i32_0 = arith.constant 0 : i32
    return %arg0, %c0_i32 : i32, i32
  }
}

</mosaic_0001>

<bundles_post_ra>
// kernel: tpu_custom_call.1
= control target key start
LH: loop header
LB: loop body
LE: loop exit
PB: predicated region body
PF: predicated region fallthrough
CT: control target
= control target key end

     0   :  { %s1250_s0 = inlined_call_operand.hbm [shape: f32[16,128], index: 0, kind: input, shape index: {}]   ;;  %s1251_s1 = inlined_call_operand.hbm [shape: bf16[1,128,128], index: 1, kind: input, shape index: {}]   ;;  %s1252_s2 = inlined_call_operand.vmem [shape: f32[1,1,128], index: 2, kind: input, shape index: {}]   ;;  %s1253_s3 = inlined_call_operand.hbm [shape: bf16[1,128,128], index: 3, kind: input, shape index: {}]   ;;  %s1254_s4 = inlined_call_operand.vmem [shape: f32[1,128], index: 4, kind: input, shape index: {}]   ;;  %s1255_s5 = inlined_call_operand.vmem [shape: f32[1,128], index: 5, kind: input, shape index: {}]   ;;  %s1256_s6 = inlined_call_operand.vmem [shape: f32[1,128], index: 6, kind: input, shape index: {}]   ;;  %s1257_s7 = inlined_call_operand.hbm [shape: f32[16,128], index: 7, kind: output, shape index: {}]  }
   0x1   :  { %1262 = sst [smem:[#allocation12_spill]] %s1251_s1 }
   0x2   :  { %1263 = sst [smem:[#allocation13_spill]] %s1253_s3 }
   0x3   :  { %12 = vsyncpa [#allocation3], 0 }
   0x4   :  { %14 = vsyncpa [#allocation3 + $0x1], 0 }
   0x5   :  { %15 = vsyncpa [#allocation6], 0 }
   0x6   :  { %16 = vsyncpa [#allocation4], 0 }
   0x7   :  { %18 = vsyncpa [#allocation4 + $0x1], 0  ;;  %s1066_s24 = smov 0   ;;  %s1068_s25 = smov 0  }
   0x8   :  { %s1070_s26 = smov 0   ;;  %s1072_s27 = smov 0  }
   0x9 LB: > { %s1087_s28 = sadd.s32 4294967295, %s1016_s27   ;;  %s685_s29 = sadd.s32 4294967294, %s1016_s27   ;;  %s1016_s27 = sphi %s1072_s27, %s1283_s27   ;;  %s1012_s26 = sphi %s1070_s26, %s1282_s26   ;;  %s1008_s25 = sphi %s1068_s25, %s1281_s25   ;;  %s1004_s24 = sphi %s1066_s24, %s1280_s24  }
   0xa   : > { %p44_p0 = scmp.ne.s32.totalorder %s1008_s25, %s1004_s24  ;;  %p1258_p1 = scmp.eq.s32.totalorder %s1087_s28, 0 }
   0xb   : > { %p200_p3 = scmp.eq.s32.totalorder %s685_s29, 1  ;;  %p686_p5 = scmp.ge.s32.totalorder %s1016_s27, 1 }
   0xc   : > { %p1096_p4 = por %p1258_p1, %p44_p0  ;;  %p207_p7 = scmp.lt.s32.totalorder %s1016_s27, 3 }
   0xd   : > { %p1101_p6 = por %p200_p3, %p44_p0  ;;  %s1018_s10 = smov [#allocation5]  }
   0xe   : > { %s1264_s30 = scalar_select %p1096_p4, 1, 0 }
   0xf   : > { %s1265_s8 = scalar_select %p1101_p6, 1, 0 }
  0x10   : > { %p1106_p8 = pnand %p686_p5, %p207_p7  ;;  %s219_s11 = sshll.u32 %s1018_s10, 4  ;;  %s220_s11 = int_to_ptr.vmem [resolvable:$true] %s219_s11 }
  0x11   : > { %s1019_s13 = smov [#allocation7]   ;;  %s879_s15 = scalar_lea.vmem %s220_s11, 1024 }
  0x12   : > { %s1266_s9 = scalar_select %p1106_p8, 1, 0 }
  0x13   : > { %p791_p9 = pneg %p1106_p8  ;;  %s235_s14 = sshll.u32 %s1019_s13, 4  ;;  %s236_s14 = int_to_ptr.vmem [resolvable:$true] %s235_s14 }
  0x14   : > { %p880_p13 = scmp.ne.s32.totalorder %s220_s11, %s879_s15  ;;  %p887_p5 = scmp.lt.s32.totalorder %s220_s11, %s220_s11 }
  0x15   : > { %p1115_p11 = pnand %p791_p9, %p1258_p1  ;;  %p888_p7 = scmp.lt.s32.totalorder %s879_s15, %s879_s15 }
  0x17   : > { %p870_p12 = pneg %p1115_p11  ;;  %p889_p10 = por %p888_p7, %p887_p5 }
  0x19   : > { %p882_p0 = pnand %p880_p13, %p870_p12 }
  0x1b   : > { %p883_p3 = pneg %p882_p0 }
  0x1d   : > { %p890_p9 = pnand %p889_p10, %p883_p3 }
  0x1f   : > { %893 = shalt.err (!%p890_p9)
}
  0x20   : > { %s1020_s16 = smov 64   ;;  %s1021_s17 = smov 4  }
  0x21   : > { %s1268_s1 = sld [smem:[#allocation12_spill]]  ;;  %s905_s20 = scalar_lea.vmem %s236_s14, 1024 }
  0x22   : > { %p906_p1 = scmp.ne.s32.totalorder %s236_s14, %s905_s20  ;;  %p913_p2 = scmp.lt.s32.totalorder %s236_s14, %s236_s14 }
  0x23   : > { %p914_p6 = scmp.lt.s32.totalorder %s905_s20, %s905_s20 }
  0x24   : > { %p908_p13 = pnand %p906_p1, %p870_p12 }
  0x25   : > { %p915_p5 = por %p914_p6, %p913_p2 }
  0x26   : > { %p909_p0 = pneg %p908_p13 }
  0x27   : > { %794 = dma.hbm_to_vmem [thread:$0]  (!%p1115_p11), %s1268_s1, 1024, %s220_s11, [#allocation6], %s1020_s16, %s1020_s16, %s1021_s17  }
  0x28   : > { %p916_p10 = pnand %p915_p5, %p909_p0 }
  0x2a   : > { %919 = shalt.err (!%p916_p10)
}
  0x2b   : > { %s1269_s3 = sld [smem:[#allocation13_spill]]  ;;  %s1138_s23 = sadd.s32 1, %s1016_s27  }
  0x2c   : > { %s31_s29 = sadd.s32 1, %s1012_s26  ;;  %s28_s10 = ssub.s32 %s1016_s27, %s1138_s23 }
  0x2d   : > { %p38_p1 = scmp.ne.s32.totalorder %s1012_s26, %s1008_s25  ;;  %p29_p2 = scmp.eq.s32.totalorder %s28_s10, 0 }
  0x2e   : > { %p39_p6 = scmp.eq.s32.totalorder %s1016_s27, 0  ;;  %p1270_p12 = scmp.eq.s32.totalorder %s1087_s28, 1 }
  0x2f   : > { %p808_p7 = scmp.lt.s32.totalorder %s1016_s27, 2  ;;  %s258_s13 = sand.u32 1, %s1012_s26  }
  0x30   : > { %p1148_p3 = por %p1270_p12, %p38_p1  ;;  %p40_p9 = por %p39_p6, %p38_p1 }
  0x31   : > { %797 = dma.hbm_to_vmem [thread:$0]  (!%p1115_p11), %s1269_s3, 1024, %s236_s14, [#allocation6], %s1020_s16, %s1020_s16, %s1021_s17  }
  0x32   : > { %s1271_s11 = scalar_select %p1148_p3, 1, 0 }
  0x33   : > { %s1154_s12 = scalar_select %p29_p2, %s1012_s26, %s31_s29  }
  0x34   : > { %s690_s15 = sshll.u32 %s258_s13, 3  ;;  %s691_s14 = sshll.u32 %s1016_s27, 7 }
  0x35   : > { %s1161_s18 = scalar_lea.hbm %s1250_s0, %s691_s14  ;;  %s262_s19 = scalar_lea.vmem [#allocation2], %s690_s15 }
  0x36   : > { %s269_s20 = sshll.u32 %s262_s19, 4  ;;  %p1163_p11 = pnand %p808_p7, %p40_p9  ;;  %s270_s20 = int_to_ptr.vmem [resolvable:$true] %s269_s20 }
  0x37   : > { %s259_s22 = scalar_lea.sflag [#allocation3], %s258_s13  ;;  %s920_s29 = scalar_lea.hbm %s1161_s18, 128 }
  0x38   : > { %p921_p13 = scmp.ne.s32.totalorder %s1161_s18, %s920_s29  ;;  %p922_p0 = pneg %p1163_p11 }
  0x39   : > { %s925_s16 = scalar_lea.hbm %s1250_s0, 256  ;;  %p926_p1 = scmp.lt.s32.totalorder %s1161_s18, %s1250_s0 }
  0x3a   : > { %p923_p5 = pnand %p922_p0, %p921_p13  ;;  %p927_p2 = scmp.lt.s32.totalorder %s925_s16, %s920_s29 }
  0x3c   : > { %p924_p10 = pneg %p923_p5  ;;  %p928_p6 = por %p927_p2, %p926_p1 }
  0x3e   : > { %p929_p12 = pnand %p928_p6, %p924_p10 }
  0x40   : > { %932 = shalt.err (!%p929_p12)
}
  0x41   : > { %s933_s19 = scalar_lea.vmem %s270_s20, 128  ;;  %s1022_s13 = smov [#allocation2]  }
  0x42   : > { %p934_p7 = scmp.ne.s32.totalorder %s270_s20, %s933_s19  ;;  %s938_s1 = sshll.u32 %s1022_s13, 4  ;;  %s939_s1 = int_to_ptr.vmem [resolvable:$false] %s938_s1 }
  0x43   : > { %s940_s3 = scalar_lea.vmem %s939_s1, 256  ;;  %p941_p13 = scmp.lt.s32.totalorder %s270_s20, %s939_s1 }
  0x44   : > { %p936_p9 = pnand %p934_p7, %p922_p0  ;;  %p942_p5 = scmp.lt.s32.totalorder %s940_s3, %s933_s19 }
  0x46   : > { %p937_p3 = pneg %p936_p9  ;;  %p943_p4 = por %p942_p5, %p941_p13 }
  0x48   : > { %p944_p8 = pnand %p943_p4, %p937_p3 }
  0x4a   : > { %947 = shalt.err (!%p944_p8)
}
  0x4b   : > { %801 = dma.hbm_to_vmem [thread:$0]  (!%p1163_p11), %s1161_s18, 128, %s270_s20, %s259_s22  }
  0x4c   : > { %p1273_p10 = scmp.ne.s32.totalorder %s1266_s9, 0 }
  0x4d   : > { %s1184_s29 = sand.u32 (!%p1273_p10), 1, %s1008_s25   ;;  %p1274_p4 = scmp.ne.s32.totalorder (!%p1273_p10), %s1264_s30, 0 }
  0x4e   : > { %278 = sbr.rel (%p1273_p10) target bundleno = 700 (0x2bc), region = 48  ;;  %s693_s10 = sshll.u32 (!%p1273_p10), %s1184_s29, 3 }
  0x4f   : > { %s281_s1 = scalar_lea.sflag (!%p1273_p10), [#allocation3], %s1184_s29  ;;  %s1190_s3 = scalar_lea.vmem (!%p1273_p10), [#allocation2], %s693_s10 }
  0x53   : > { %991 = dma.done.wait (%p1274_p4), %s281_s1, 128  }
  0x54   : > { %993 = vsyncadd (%p1274_p4), %s281_s1, 4294967168  ;;  %p1275_p8 = scmp.eq.s32.totalorder %s1087_s28, 0 }
  0x56   : > { %995 = dma.done.wait (%p1275_p8), [#allocation6], 2048   ;;  %p1276_p3 = pmov %p1275_p8 }
  0x57   : > { %v1023_v0 = vmov 0.0   ;;  %vm1024_vm0 = vmmov 0   ;;  %v850_v1 = vld [vmem:[#allocation5 + $0x38] sm:$0xff]   ;;  %v851_v2 = vld [vmem:[#allocation5 + $0x30] sm:$0xff]   ;;  %v852_v3 = vld [vmem:[#allocation5 + $0x28] sm:$0xff]   ;;  %s718_s17 = sshll.u32 %s1087_s28, 7 }
  0x58   : > { %997 = vsyncadd (%p1276_p3), [#allocation6], 4294965248  ;;  %739 = vmatprep.subr.bf16.mxu0 %v1023_v0  ;;  %755 = vmatprep.mubr.msk.bf16.mxu0 %vm1024_vm0, %v1023_v0  ;;  %v858_v4 = vld [vmem:[#allocation7 + $0x38] sm:$0xff]   ;;  %v853_v5 = vld [vmem:[#allocation5 + $0x20] sm:$0xff]   ;;  %s322_s15 = scalar_lea.vmem [#allocation8], %s693_s10  ;;  %s583_s30 = scalar_lea.sflag [#allocation4], %s1184_s29 }
  0x59   : > { %759 = vmatprep.subr.bf16.mxu1 %v1023_v0  ;;  %775 = vmatprep.mubr.msk.bf16.mxu1 %vm1024_vm0, %v1023_v0  ;;  %v859_v6 = vld [vmem:[#allocation7 + $0x30] sm:$0xff]   ;;  %v854_v7 = vld [vmem:[#allocation5 + $0x18] sm:$0xff]   ;;  %v860_v8 = vld [vmem:[#allocation7 + $0x28] sm:$0xff]   ;;  %s596_s19 = sshll.u32 %s322_s15, 4  ;;  %p1277_p0 = scmp.ne.s32.totalorder %s1271_s11, 0  ;;  %s597_s19 = int_to_ptr.vmem [resolvable:$true] %s596_s19 }
  0x5a   : > { %740 = vmatpush3.bf16.msra.mxu0 %v850_v1  ;;  %760 = vmatpush3.bf16.msra.mxu1 %v858_v4  ;;  %v855_v9 = vld [vmem:[#allocation5 + $0x10] sm:$0xff]   ;;  %v861_v10 = vld [vmem:[#allocation7 + $0x20] sm:$0xff]   ;;  %v856_v11 = vld [vmem:[#allocation5 + $0x8] sm:$0xff]   ;;  %s948_s9 = scalar_lea.vmem %s597_s19, 128  ;;  %s1025_s18 = smov [#allocation8]  }
  0x5b   : > { %741 = vmatprep.subr.bf16.mxu0 %v1023_v0  ;;  %761 = vmatprep.subr.bf16.mxu1 %v1023_v0  ;;  %v862_v12 = vld [vmem:[#allocation7 + $0x18] sm:$0xff]   ;;  %v857_v13 = vld [vmem:[#allocation5] sm:$0xff]   ;;  %v863_v15 = vld [vmem:[#allocation7 + $0x10] sm:$0xff]   ;;  %p949_p11 = scmp.ne.s32.totalorder %s597_s19, %s948_s9  ;;  %s952_s20 = sshll.u32 %s1025_s18, 4  ;;  %s953_s20 = int_to_ptr.vmem [resolvable:$false] %s952_s20 }
  0x5c   : > { %v324_v14 = vld [vmem:[%s1190_s3] sm:$0xff]  ;;  %v864_v17 = vld [vmem:[#allocation7 + $0x8] sm:$0xff]   ;;  %v865_v18 = vld [vmem:[#allocation7] sm:$0xff]   ;;  %s594_s3 = scalar_lea.hbm %s1257_s7, %s718_s17  ;;  %s954_s28 = scalar_lea.vmem %s953_s20, 256 }
  0x5d   : > { %v325_v16 = vpack.c.bf16 %v324_v14, %v324_v14  ;;  %v697_v19 = vld [vmem:[%s1252_s2] ss:$0 sm:$0xff]  ;;  %p950_p1 = pnand %p949_p11, %p1277_p0  ;;  %p955_p6 = scmp.lt.s32.totalorder %s597_s19, %s953_s20 }
  0x5e   : > { %742 = vmatpush3.bf16.msra.mxu0 %v851_v2  ;;  %762 = vmatpush3.bf16.msra.mxu1 %v859_v6  ;;  %v706_v27 = vld [vmem:[%s1254_s4] ss:$0 sm:$0xff]  ;;  %p956_p12 = scmp.lt.s32.totalorder %s954_s28, %s948_s9 }
  0x5f   : > { %743 = vmatprep.subr.bf16.mxu0 %v1023_v0  ;;  %763 = vmatprep.subr.bf16.mxu1 %v1023_v0  ;;  %v715_v45 = vld [vmem:[%s1255_s5] ss:$0 sm:$0xff]  ;;  %p951_p2 = pneg %p950_p1 }
  0x60   : > { %v716_v47 = vld [vmem:[%s1256_s6] ss:$0 sm:$0xff]  ;;  %p957_p7 = por %p956_p12, %p955_p6 }
  0x62   : > { %744 = vmatpush3.bf16.msra.mxu0 %v852_v3  ;;  %764 = vmatpush3.bf16.msra.mxu1 %v860_v8  ;;  %p958_p9 = pnand %p957_p7, %p951_p2 }
  0x63   : > { %745 = vmatprep.subr.bf16.mxu0 %v1023_v0  ;;  %765 = vmatprep.subr.bf16.mxu1 %v1023_v0 }
  0x66   : > { %746 = vmatpush3.bf16.msra.mxu0 %v853_v5  ;;  %766 = vmatpush3.bf16.msra.mxu1 %v861_v10 }
  0x67   : > { %747 = vmatprep.subr.bf16.mxu0 %v1023_v0  ;;  %767 = vmatprep.subr.bf16.mxu1 %v1023_v0 }
  0x6a   : > { %748 = vmatpush3.bf16.msra.mxu0 %v854_v7  ;;  %768 = vmatpush3.bf16.msra.mxu1 %v862_v12 }
  0x6b   : > { %749 = vmatprep.subr.bf16.mxu0 %v1023_v0  ;;  %769 = vmatprep.subr.bf16.mxu1 %v1023_v0 }
  0x6e   : > { %750 = vmatpush3.bf16.msra.mxu0 %v855_v9  ;;  %770 = vmatpush3.bf16.msra.mxu1 %v863_v15 }
  0x6f   : > { %751 = vmatprep.subr.bf16.mxu0 %v1023_v0  ;;  %771 = vmatprep.subr.bf16.mxu1 %v1023_v0 }
  0x72   : > { %752 = vmatpush3.bf16.msra.mxu0 %v856_v11  ;;  %772 = vmatpush3.bf16.msra.mxu1 %v864_v17 }
  0x73   : > { %753 = vmatprep.subr.bf16.mxu0 %v1023_v0  ;;  %773 = vmatprep.subr.bf16.mxu1 %v1023_v0 }
  0x76   : > { %754 = vmatpush3.bf16.msra.mxu0 %v857_v13  ;;  %774 = vmatpush3.bf16.msra.mxu1 %v865_v18 }
  0x79   : > { %756 = vmatmul.mubr.bf16.vlgmr.msra.gmra.mxu0 %v325_v16 }
 0x139   : > { %v431_v20 = vpop.f32.mrf.mxu0 }
 0x13a   : > { %v432_v21 = vadd.f32 %v697_v19, %v431_v20 }
 0x13b   : > { %v757_v22 = vpop.f32.mrf.mxu0 }
 0x13c   : > { %v437_v23 = vmax.f32 %v432_v21, 0.0 }
 0x13d   : > { %v434_v24 = vpop.f32.mrf.mxu0 }
 0x13e   : > { %v438_v25 = vpack.c.bf16 %v437_v23, %v437_v23 }
 0x13f   : > { %v758_v26 = vpop.f32.mrf.mxu0 }
 0x140   : > { %776 = vmatmul.mubr.bf16.vlgmr.msra.gmra.mxu1 %v438_v25 }
 0x200   : > { %v544_v28 = vpop.f32.mrf.mxu1 }
 0x201   : > { %v545_v29 = vadd.f32 %v706_v27, %v544_v28 }
 0x202   : > { %v777_v30 = vpop.f32.mrf.mxu1 }
 0x203   : > { %v552_v31 = vadd.f32 %v545_v29, %v324_v14 }
 0x204   : > { %v547_v32 = vpop.f32.mrf.mxu1 }
 0x205   : > { %553 = vadd.xlane.f32.xlu0 %v552_v31  ;;  %v556_v34 = vmul.f32 %v552_v31, %v552_v31 }
 0x206   : > { %v778_v33 = vpop.f32.mrf.mxu1 }
 0x209   : > { %557 = vadd.xlane.f32.xlu0 %v556_v34 }
 0x28e   : > { %v554_v35 = vpop.xlane.xlu0 %553 }
 0x28f   : > { %v555_v36 = vmul.f32 0.03125, %v554_v35 }
 0x291   : > { %v560_v38 = vmul.f32 %v555_v36, %v555_v36  ;;  %v563_v43 = vsub.f32 %v552_v31, %v555_v36 }
 0x292   : > { %v558_v37 = vpop.xlane.xlu0 %557 }
 0x293   : > { %v559_v39 = vmul.f32 0.03125, %v558_v37 }
 0x295   : > { %v561_v40 = vsub.f32 %v559_v39, %v560_v38 }
 0x297   : > { %v562_v41 = vmax.f32 %v561_v40, 0.0 }
 0x299   : > { %v564_v42 = vadd.f32 1e-05, %v562_v41 }
 0x29b   : > { %866 = vrsqrt.f32 %v564_v42 }
 0x2a8   : > { %v867_v44 = vpop.eup %866 }
 0x2a9   : > { %v566_v46 = vmul.f32 %v867_v44, %v563_v43 }
 0x2ab   : > { %v573_v48 = vmul.f32 %v715_v45, %v566_v46 }
 0x2ad   : > { %v580_v49 = vadd.f32 %v716_v47, %v573_v48 }
 0x2af   : > { %581 = vst [vmem:[%s322_s15] sm:$0xff] %v580_v49 }
 0x2b0   : > { %961 = shalt.err (!%p958_p9)
}
 0x2b1   : > { %s962_s10 = scalar_lea.hbm %s594_s3, 128  ;;  %s966_s22 = scalar_lea.hbm %s1257_s7, 256 }
 0x2b2   : > { %p963_p13 = scmp.ne.s32.totalorder %s594_s3, %s962_s10  ;;  %p967_p4 = scmp.lt.s32.totalorder %s594_s3, %s1257_s7 }
 0x2b3   : > { %p968_p8 = scmp.lt.s32.totalorder %s966_s22, %s962_s10 }
 0x2b4   : > { %p964_p5 = pnand %p963_p13, %p1277_p0 }
 0x2b5   : > { %p969_p3 = por %p968_p8, %p967_p4 }
 0x2b6   : > { %p965_p10 = pneg %p964_p5 }
 0x2b8   : > { %p970_p11 = pnand %p969_p3, %p965_p10 }
 0x2ba   : > { %973 = shalt.err (!%p970_p11)
}
 0x2bb   : > { %789 = dma.vmem_to_hbm [thread:$0]  (%p1277_p0), %s597_s19, 128, %s594_s3, %s583_s30  }
 0x2bc PF: > { %s608_s17 = sand.u32 1, %s1004_s24   ;;  %p1278_p1 = scmp.ne.s32.totalorder %s1265_s8, 0 }
 0x2bd   : > { %p1279_p2 = scmp.ge.s32.totalorder %s1016_s27, 2  ;;  %s609_s15 = scalar_lea.sflag [#allocation4], %s608_s17 }
 0x2bf   : > { %p803_p6 = pnand %p1279_p2, %p1278_p1 }
 0x2c1   : > { %p804_p12 = pneg %p803_p6 }
 0x2c3   : > { %999 = dma.done.wait (%p804_p12), %s609_s15, 128  }
 0x2c4   : > { %1001 = vsyncadd (%p804_p12), %s609_s15, 4294967168  ;;  %p21_p7 = scmp.ge.s32.totalorder %s1138_s23, 4   ;;  %s1280_s24 = smov %s1008_s25 }
 0x2c5   : > { %s1281_s25 = smov %s1012_s26  ;;  %s1282_s26 = smov %s1154_s12 }
 0x2c6   : > { %s1283_s27 = smov %s1138_s23  ;;  %23 = sbr.rel (!%p21_p7) target bundleno = 9 (0x9), region = 101 }
 0x2cb   :  { %614 = vsyncpa [#allocation3], 1 }
 0x2cc   :  { %616 = vsyncpa [#allocation3 + $0x1], 1 }
 0x2cd   :  { %617 = vsyncpa [#allocation6], 1 }
 0x2ce   :  { %618 = vsyncpa [#allocation4], 1 }
 0x2cf   :  { %620 = vsyncpa [#allocation4 + $0x1], 1 }

</bundles_post_ra>
